<compile_context>
chip_gen: v6e
topology: v6e:2x2x1
jax: 0.10.0
libtpu: 0.0.40
codegen_flags: <defaults>
</compile_context>

<pallas_src>
import functools

import jax
import jax.numpy as jnp
from jax import lax
from jax.experimental import pallas as pl
from jax.experimental.pallas import tpu as pltpu

EPS = 1e-5


def _round_up(x, m):
    return (x + m - 1) // m * m


@functools.lru_cache(maxsize=1)
def _vmem_capacity_bytes():
    """Physical VMEM per TensorCore; conservative (v7x) fallback if unknown."""
    try:
        info = pltpu.get_tpu_info()
        for name in ("vmem_capacity_bytes", "vmem_bytes", "vmem_size_bytes"):
            v = getattr(info, name, None)
            if v:
                return int(v)
    except Exception:
        pass
    return 64 * 1024 * 1024


def _choose_tb(nc, hwp, budget):
    """Instances per grid step for the single-sweep path (0 => use chunked path)."""
    # 4 f32 I/O planes, double-buffered by the pipeline, + ~2 compiler temporaries.
    bytes_per_instance = (4 * 2 + 2) * hwp * 4
    tb_max = budget // bytes_per_instance
    if tb_max < 1:
        return 0
    tb = min(int(tb_max), nc)
    # v7x megacore: keep >= 4 grid steps (>= 2 per TensorCore) when enough instances.
    if nc >= 32:
        tb = min(tb, nc // 4)
    # Sublane-align the instance dim (multiple of 8) when VMEM allows it.
    if tb >= 8:
        tb -= tb % 8
    elif tb_max >= 8:
        tb = 8
    return max(1, int(tb))


# ---------------------------------------------------------------------------
# Single-sweep kernel: whole (padded) spatial extent of TB instances per step.
# ---------------------------------------------------------------------------
def _fin_kernel(p_ref, xr_ref, xi_ref, or_ref, oi_ref, *, hw, hwp):
    xr = xr_ref[...]
    xi = xi_ref[...]
    inv_hw = jnp.float32(1.0 / hw)

    # complex mean over the lane-dense spatial axis (padded lanes are zero)
    mean_r = jnp.sum(xr, axis=-1, keepdims=True) * inv_hw
    mean_i = jnp.sum(xi, axis=-1, keepdims=True) * inv_hw
    dr = xr - mean_r
    di = xi - mean_i

    ssq = jnp.sum(dr * dr + di * di, axis=-1, keepdims=True)
    if hwp != hw:
        # Padded lanes hold x == 0, so each contributes exactly |mean|^2 to ssq.
        # Subtract analytically instead of masking (saves iota/cmp/2x where passes).
        ssq = ssq - jnp.float32(hwp - hw) * (mean_r * mean_r + mean_i * mean_i)
        ssq = jnp.maximum(ssq, 0.0)

    # torch.var(complex, unbiased=False) == mean(|x - mean|^2)  (real-valued)
    inv = lax.rsqrt(ssq * inv_hw + EPS)
    nr = dr * inv
    ni = di * inv

    # packed affine params in lanes [gr, gi, br, bi, 0, 0, 0, 0]
    gr = p_ref[:, :, 0:1]
    gi = p_ref[:, :, 1:2]
    br = p_ref[:, :, 2:3]
    bi = p_ref[:, :, 3:4]

    or_ref[...] = gr * nr - gi * ni + br
    oi_ref[...] = gr * ni + gi * nr + bi


def _blocked_forward(xr, xi, p, NC, HW, HWp, tb, vmem_limit):
    if HWp != HW:
        xr = jnp.pad(xr, ((0, 0), (0, HWp - HW)))
        xi = jnp.pad(xi, ((0, 0), (0, HWp - HW)))
    G = pl.cdiv(NC, tb)
    NCp = G * tb
    if NCp != NC:
        xr = jnp.pad(xr, ((0, NCp - NC), (0, 0)))
        xi = jnp.pad(xi, ((0, NCp - NC), (0, 0)))
        p = jnp.pad(p, ((0, NCp - NC), (0, 0)))

    xr = xr.reshape(G, tb, HWp)
    xi = xi.reshape(G, tb, HWp)
    p = p.reshape(G, tb, 8)

    param_spec = pl.BlockSpec((1, tb, 8), lambda g: (g, 0, 0))
    data_spec = pl.BlockSpec((1, tb, HWp), lambda g: (g, 0, 0))

    out_r, out_i = pl.pallas_call(
        functools.partial(_fin_kernel, hw=HW, hwp=HWp),
        grid=(G,),
        in_specs=[param_spec, data_spec, data_spec],
        out_specs=(data_spec, data_spec),
        out_shape=(jax.ShapeDtypeStruct((G, tb, HWp), jnp.float32),) * 2,
        compiler_params=pltpu.CompilerParams(
            dimension_semantics=("parallel",),
            vmem_limit_bytes=vmem_limit,
        ),
    )(p, xr, xi)
    return out_r.reshape(NCp, HWp), out_i.reshape(NCp, HWp)


# ---------------------------------------------------------------------------
# Spatially-chunked two-pass path for large H*W.
# ---------------------------------------------------------------------------
def _stats_kernel(xr_ref, xi_ref, sr_ref, si_ref, ss_ref):
    @pl.when(pl.program_id(1) == 0)
    def _():
        sr_ref[...] = jnp.zeros_like(sr_ref)
        si_ref[...] = jnp.zeros_like(si_ref)
        ss_ref[...] = jnp.zeros_like(ss_ref)

    xr = xr_ref[...]
    xi = xi_ref[...]
    sr_ref[...] += jnp.sum(xr, axis=-1, keepdims=True)
    si_ref[...] += jnp.sum(xi, axis=-1, keepdims=True)
    ss_ref[...] += jnp.sum(xr * xr + xi * xi, axis=-1, keepdims=True)


def _apply_kernel(p_ref, sr_ref, si_ref, ss_ref, xr_ref, xi_ref, or_ref, oi_ref, *, hw):
    inv_hw = jnp.float32(1.0 / hw)
    mean_r = sr_ref[:, :, 0:1] * inv_hw
    mean_i = si_ref[:, :, 0:1] * inv_hw
    # one-pass E[|x|^2] - |E[x]|^2 (clamped); padded lanes contribute zero to all sums
    var = jnp.maximum(ss_ref[:, :, 0:1] * inv_hw - (mean_r * mean_r + mean_i * mean_i), 0.0)
    inv = lax.rsqrt(var + EPS)

    gr = p_ref[:, :, 0:1]
    gi = p_ref[:, :, 1:2]
    br = p_ref[:, :, 2:3]
    bi = p_ref[:, :, 3:4]

    nr = (xr_ref[...] - mean_r) * inv
    ni = (xi_ref[...] - mean_i) * inv
    or_ref[...] = gr * nr - gi * ni + br
    oi_ref[...] = gr * ni + gi * nr + bi


def _chunked_forward(xr, xi, p, NC, HW, budget, spatial_chunk, vmem_limit):
    TBc = 8  # one sublane group of instances per step
    if spatial_chunk is None:
        chw = max(128, (budget // (10 * TBc * 4)) // 128 * 128)
    else:
        chw = _round_up(int(spatial_chunk), 128)
    K = pl.cdiv(HW, chw)
    HWc = K * chw
    G = pl.cdiv(NC, TBc)
    NCc = G * TBc

    xr = jnp.pad(xr, ((0, NCc - NC), (0, HWc - HW)))
    xi = jnp.pad(xi, ((0, NCc - NC), (0, HWc - HW)))
    p = jnp.pad(p, ((0, NCc - NC), (0, 0)))

    xr = xr.reshape(G, TBc, HWc)
    xi = xi.reshape(G, TBc, HWc)
    p = p.reshape(G, TBc, 8)

    data_spec = pl.BlockSpec((1, TBc, chw), lambda g, k: (g, 0, k))
    stat_spec = pl.BlockSpec((1, TBc, 128), lambda g, k: (g, 0, 0))
    param_spec = pl.BlockSpec((1, TBc, 8), lambda g, k: (g, 0, 0))
    stat_shape = jax.ShapeDtypeStruct((G, TBc, 128), jnp.float32)

    sr, si, ss = pl.pallas_call(
        _stats_kernel,
        grid=(G, K),
        in_specs=[data_spec, data_spec],
        out_specs=(stat_spec, stat_spec, stat_spec),
        out_shape=(stat_shape, stat_shape, stat_shape),
        compiler_params=pltpu.CompilerParams(
            dimension_semantics=("parallel", "arbitrary"),
            vmem_limit_bytes=vmem_limit,
        ),
    )(xr, xi)

    out_r, out_i = pl.pallas_call(
        functools.partial(_apply_kernel, hw=HW),
        grid=(G, K),
        in_specs=[param_spec, stat_spec, stat_spec, stat_spec, data_spec, data_spec],
        out_specs=(data_spec, data_spec),
        out_shape=(jax.ShapeDtypeStruct((G, TBc, HWc), jnp.float32),) * 2,
        compiler_params=pltpu.CompilerParams(
            dimension_semantics=("parallel", "arbitrary"),
            vmem_limit_bytes=vmem_limit,
        ),
    )(p, sr, si, ss, xr, xi)
    return out_r.reshape(NCc, HWc), out_i.reshape(NCc, HWc)


# ---------------------------------------------------------------------------
# Public entry point (jit'ed so the wrapper passes fuse with pad/slice/recombine).
# ---------------------------------------------------------------------------
@functools.partial(jax.jit, static_argnames=("tb", "spatial_chunk"))
def frequency_instance_norm_2d(x, gamma, beta, *, tb=None, spatial_chunk=None):
    """x: complex64 (N, C, H, W); gamma, beta: complex64 (C,)."""
    N, C, H, W = x.shape
    NC = N * C
    HW = H * W
    HWp = _round_up(HW, 128)

    cap = _vmem_capacity_bytes()
    budget = min(cap // 4, 48 * 1024 * 1024)          # v7x ~16 MiB, v5e/v6e ~32 MiB
    vmem_limit = min(cap * 3 // 4, 96 * 1024 * 1024)  # v7x 48 MiB, v5e/v6e 96 MiB

    # lane-dense (instance, spatial) planes — fused by jit with the pads below
    xr = jnp.real(x).astype(jnp.float32).reshape(NC, HW)
    xi = jnp.imag(x).astype(jnp.float32).reshape(NC, HW)

    # per-(n, c) packed affine params: lanes [gr, gi, br, bi, 0, 0, 0, 0]
    p = jnp.stack([jnp.real(gamma), jnp.imag(gamma),
                   jnp.real(beta), jnp.imag(beta)], axis=-1).astype(jnp.float32)
    p = jnp.pad(p, ((0, 0), (0, 4)))
    p = jnp.tile(p, (N, 1))  # (NC, 8)

    if tb is None:
        tb_sel = 0 if spatial_chunk is not None else _choose_tb(NC, HWp, budget)
    else:
        tb_sel = int(tb)

    if tb_sel == 0:
        out_r, out_i = _chunked_forward(xr, xi, p, NC, HW, budget, spatial_chunk, vmem_limit)
    else:
        out_r, out_i = _blocked_forward(xr, xi, p, NC, HW, HWp, tb_sel, vmem_limit)

    out = lax.complex(out_r[:NC, :HW], out_i[:NC, :HW]).astype(jnp.complex64)
    return out.reshape(N, C, H, W)


def _reference(x, gamma, beta):
    mean = jnp.mean(x, axis=(-2, -1), keepdims=True)
    d = x - mean
    var = jnp.mean(jnp.abs(d) ** 2, axis=(-2, -1), keepdims=True)  # real variance
    x_hat = d / jnp.sqrt(var + EPS)
    return gamma.reshape(1, -1, 1, 1) * x_hat + beta.reshape(1, -1, 1, 1)


if __name__ == "__main__":
    key = jax.random.PRNGKey(0)
    k1, k2, k3, k4, k5, k6 = jax.random.split(key, 6)

    N, C, H, W = 2, 4, 16, 16
    x = (jax.random.normal(k1, (N, C, H, W), jnp.float32)
         + 1j * jax.random.normal(k2, (N, C, H, W), jnp.float32)).astype(jnp.complex64)
    gamma = (jnp.ones((C,), jnp.float32) + 0.1 * jax.random.normal(k3, (C,), jnp.float32)
             + 1j * 0.1 * jax.random.normal(k4, (C,), jnp.float32)).astype(jnp.complex64)
    beta = (0.1 * jax.random.normal(k5, (C,), jnp.float32)
            + 1j * 0.1 * jax.random.normal(k6, (C,), jnp.float32)).astype(jnp.complex64)

    ref = jax.block_until_ready(_reference(x, gamma, beta))

    # main single-sweep lane-dense path
    out = jax.block_until_ready(frequency_instance_norm_2d(x, gamma, beta))
    assert out.shape == (N, C, H, W) and out.dtype == jnp.complex64
    assert jnp.allclose(out, ref, atol=1e-4, rtol=1e-4)

    # spatially-chunked two-pass path (forced small chunk to exercise it here)
    out_c = jax.block_until_ready(
        frequency_instance_norm_2d(x, gamma, beta, spatial_chunk=128))
    assert jnp.allclose(out_c, ref, atol=1e-4, rtol=1e-4)

    # non-multiple-of-128 spatial size exercises the analytic padding correction
    x2 = x[:, :, :12, :12]
    ref2 = jax.block_until_ready(_reference(x2, gamma, beta))
    out2 = jax.block_until_ready(frequency_instance_norm_2d(x2, gamma, beta))
    assert jnp.allclose(out2, ref2, atol=1e-4, rtol=1e-4)

    print("KERNEL_OK")
</pallas_src>

<mosaic_0001>
module attributes {stable_mosaic.version = 11 : i64} {
  func.func @_fin_kernel(%arg0: i32, %arg1: memref<1x8x8xf32, #tpu.memory_space<vmem>>, %arg2: memref<1x8x256xf32, #tpu.memory_space<vmem>>, %arg3: memref<1x8x256xf32, #tpu.memory_space<vmem>>, %arg4: memref<1x8x256xf32, #tpu.memory_space<vmem>>, %arg5: memref<1x8x256xf32, #tpu.memory_space<vmem>>) attributes {dimension_semantics = [#tpu.dimension_semantics<parallel>], iteration_bounds = array<i64: 1>, scalar_prefetch = 0 : i64, scratch_operands = 0 : i64, tpu.core_type = #tpu.core_type<tc>, window_params = [{transform_indices = @transform_0, window_bounds = array<i64: 1, 8, 8>}, {transform_indices = @transform_1, window_bounds = array<i64: 1, 8, 256>}, {transform_indices = @transform_2, window_bounds = array<i64: 1, 8, 256>}, {transform_indices = @transform_3, window_bounds = array<i64: 1, 8, 256>}, {transform_indices = @transform_4, window_bounds = array<i64: 1, 8, 256>}]} {
    %c0 = arith.constant 0 : index
    %c0_0 = arith.constant 0 : index
    %c0_1 = arith.constant 0 : index
    %0 = vector.load %arg2[%c0, %c0_0, %c0_1] : memref<1x8x256xf32, #tpu.memory_space<vmem>>, vector<1x8x256xf32>
    %c0_2 = arith.constant 0 : index
    %c0_3 = arith.constant 0 : index
    %c0_4 = arith.constant 0 : index
    %1 = vector.load %arg3[%c0_2, %c0_3, %c0_4] : memref<1x8x256xf32, #tpu.memory_space<vmem>>, vector<1x8x256xf32>
    %cst = arith.constant dense<0.000000e+00> : vector<1x8xf32>
    %2 = vector.multi_reduction <add>, %0, %cst [2] : vector<1x8x256xf32> to vector<1x8xf32>
    %3 = vector.shape_cast %2 : vector<1x8xf32> to vector<1x8x1xf32>
    %cst_5 = arith.constant 3.906250e-03 : f32
    %4 = vector.broadcast %cst_5 : f32 to vector<1x8x1xf32>
    %5 = arith.mulf %3, %4 : vector<1x8x1xf32>
    %cst_6 = arith.constant dense<0.000000e+00> : vector<1x8xf32>
    %6 = vector.multi_reduction <add>, %1, %cst_6 [2] : vector<1x8x256xf32> to vector<1x8xf32>
    %7 = vector.shape_cast %6 : vector<1x8xf32> to vector<1x8x1xf32>
    %cst_7 = arith.constant 3.906250e-03 : f32
    %8 = vector.broadcast %cst_7 : f32 to vector<1x8x1xf32>
    %9 = arith.mulf %7, %8 : vector<1x8x1xf32>
    %10 = vector.broadcast %5 : vector<1x8x1xf32> to vector<1x8x256xf32>
    %11 = arith.subf %0, %10 : vector<1x8x256xf32>
    %12 = vector.broadcast %9 : vector<1x8x1xf32> to vector<1x8x256xf32>
    %13 = arith.subf %1, %12 : vector<1x8x256xf32>
    %14 = arith.mulf %11, %11 : vector<1x8x256xf32>
    %15 = arith.mulf %13, %13 : vector<1x8x256xf32>
    %16 = arith.addf %14, %15 : vector<1x8x256xf32>
    %cst_8 = arith.constant dense<0.000000e+00> : vector<1x8xf32>
    %17 = vector.multi_reduction <add>, %16, %cst_8 [2] : vector<1x8x256xf32> to vector<1x8xf32>
    %18 = vector.shape_cast %17 : vector<1x8xf32> to vector<1x8x1xf32>
    %cst_9 = arith.constant 3.906250e-03 : f32
    %19 = vector.broadcast %cst_9 : f32 to vector<1x8x1xf32>
    %20 = arith.mulf %18, %19 : vector<1x8x1xf32>
    %cst_10 = arith.constant 9.99999974E-6 : f32
    %21 = vector.broadcast %cst_10 : f32 to vector<1x8x1xf32>
    %22 = arith.addf %20, %21 : vector<1x8x1xf32>
    %23 = math.rsqrt %22 : vector<1x8x1xf32>
    %24 = vector.broadcast %23 : vector<1x8x1xf32> to vector<1x8x256xf32>
    %25 = arith.mulf %11, %24 : vector<1x8x256xf32>
    %26 = vector.broadcast %23 : vector<1x8x1xf32> to vector<1x8x256xf32>
    %27 = arith.mulf %13, %26 : vector<1x8x256xf32>
    %c0_11 = arith.constant 0 : index
    %c0_12 = arith.constant 0 : index
    %c0_13 = arith.constant 0 : index
    %28 = vector.load %arg1[%c0_11, %c0_12, %c0_13] : memref<1x8x8xf32, #tpu.memory_space<vmem>>, vector<1x8x1xf32>
    %c0_14 = arith.constant 0 : index
    %c0_15 = arith.constant 0 : index
    %c1 = arith.constant 1 : index
    %29 = vector.load %arg1[%c0_14, %c0_15, %c1] : memref<1x8x8xf32, #tpu.memory_space<vmem>>, vector<1x8x1xf32>
    %c0_16 = arith.constant 0 : index
    %c0_17 = arith.constant 0 : index
    %c2 = arith.constant 2 : index
    %30 = vector.load %arg1[%c0_16, %c0_17, %c2] : memref<1x8x8xf32, #tpu.memory_space<vmem>>, vector<1x8x1xf32>
    %c0_18 = arith.constant 0 : index
    %c0_19 = arith.constant 0 : index
    %c3 = arith.constant 3 : index
    %31 = vector.load %arg1[%c0_18, %c0_19, %c3] : memref<1x8x8xf32, #tpu.memory_space<vmem>>, vector<1x8x1xf32>
    %32 = vector.broadcast %28 : vector<1x8x1xf32> to vector<1x8x256xf32>
    %33 = arith.mulf %32, %25 : vector<1x8x256xf32>
    %34 = vector.broadcast %29 : vector<1x8x1xf32> to vector<1x8x256xf32>
    %35 = arith.mulf %34, %27 : vector<1x8x256xf32>
    %36 = arith.subf %33, %35 : vector<1x8x256xf32>
    %37 = vector.broadcast %30 : vector<1x8x1xf32> to vector<1x8x256xf32>
    %38 = arith.addf %36, %37 : vector<1x8x256xf32>
    %c0_20 = arith.constant 0 : index
    %c0_21 = arith.constant 0 : index
    %c0_22 = arith.constant 0 : index
    %39 = vector.load %arg4[%c0_20, %c0_21, %c0_22] : memref<1x8x256xf32, #tpu.memory_space<vmem>>, vector<1x8x256xf32>
    tpu.vector_store %arg4[%c0_20, %c0_21, %c0_22], %38 {strides = array<i32>} : memref<1x8x256xf32, #tpu.memory_space<vmem>>, vector<1x8x256xf32>,
    %40 = vector.broadcast %28 : vector<1x8x1xf32> to vector<1x8x256xf32>
    %41 = arith.mulf %40, %27 : vector<1x8x256xf32>
    %42 = vector.broadcast %29 : vector<1x8x1xf32> to vector<1x8x256xf32>
    %43 = arith.mulf %42, %25 : vector<1x8x256xf32>
    %44 = arith.addf %41, %43 : vector<1x8x256xf32>
    %45 = vector.broadcast %31 : vector<1x8x1xf32> to vector<1x8x256xf32>
    %46 = arith.addf %44, %45 : vector<1x8x256xf32>
    %c0_23 = arith.constant 0 : index
    %c0_24 = arith.constant 0 : index
    %c0_25 = arith.constant 0 : index
    %47 = vector.load %arg5[%c0_23, %c0_24, %c0_25] : memref<1x8x256xf32, #tpu.memory_space<vmem>>, vector<1x8x256xf32>
    tpu.vector_store %arg5[%c0_23, %c0_24, %c0_25], %46 {strides = array<i32>} : memref<1x8x256xf32, #tpu.memory_space<vmem>>, vector<1x8x256xf32>,
    return
  }
  func.func @transform_0(%arg0: i32) -> (i32, i32, i32) {
    %c0_i32 = arith.constant 0 : i32
    %c0_i32_0 = arith.constant 0 : i32
    %c0_i32_1 = arith.constant 0 : i32
    return %arg0, %c0_i32, %c0_i32_0 : i32, i32, i32
  }
  func.func @transform_1(%arg0: i32) -> (i32, i32, i32) {
    %c0_i32 = arith.constant 0 : i32
    %c0_i32_0 = arith.constant 0 : i32
    %c0_i32_1 = arith.constant 0 : i32
    return %arg0, %c0_i32, %c0_i32_0 : i32, i32, i32
  }
  func.func @transform_2(%arg0: i32) -> (i32, i32, i32) {
    %c0_i32 = arith.constant 0 : i32
    %c0_i32_0 = arith.constant 0 : i32
    %c0_i32_1 = arith.constant 0 : i32
    return %arg0, %c0_i32, %c0_i32_0 : i32, i32, i32
  }
  func.func @transform_3(%arg0: i32) -> (i32, i32, i32) {
    %c0_i32 = arith.constant 0 : i32
    %c0_i32_0 = arith.constant 0 : i32
    %c0_i32_1 = arith.constant 0 : i32
    return %arg0, %c0_i32, %c0_i32_0 : i32, i32, i32
  }
  func.func @transform_4(%arg0: i32) -> (i32, i32, i32) {
    %c0_i32 = arith.constant 0 : i32
    %c0_i32_0 = arith.constant 0 : i32
    %c0_i32_1 = arith.constant 0 : i32
    return %arg0, %c0_i32, %c0_i32_0 : i32, i32, i32
  }
}

</mosaic_0001>

<bundles_post_ra>
// kernel: custom-call
= control target key start
LH: loop header
LB: loop body
LE: loop exit
PB: predicated region body
PF: predicated region fallthrough
CT: control target
= control target key end

     0   :  { %2 = vsyncpa [#allocation0], 0  ;;  %s47_s0 = inlined_call_operand.hbm [shape: c64[4], index: 0, kind: input, shape index: {}]   ;;  %s48_s1 = inlined_call_operand.vmem [shape: f32[4], index: 1, kind: output, shape index: {}]  }
   0x1   :  { %s3_s8 = sshll.u32 %s48_s1, 4  ;;  %s4_s8 = int_to_ptr.vmem [resolvable:$true] %s3_s8 }
   0x2   :  { %s17_s9 = scalar_lea.vmem %s4_s8, 16  ;;  %p22_p1 = scmp.lt.s32.totalorder %s4_s8, %s4_s8 }
   0x3   :  { %p18_p0 = scmp.ne.s32.totalorder %s4_s8, %s17_s9  ;;  %p23_p2 = scmp.lt.s32.totalorder %s17_s9, %s17_s9 }
   0x5   :  { %p24_p3 = por %p23_p2, %p22_p1 }
   0x7   :  { %p25_p4 = pnand %p24_p3, %p18_p0 }
   0x9   :  { %28 = shalt.err (!%p25_p4)  }
   0xa   :  { %6 = dma.hbm_to_vmem [thread:$0]  %s47_s0, 16, %s4_s8, [#allocation0] }
   0xb   :  { %29 = dma.done.wait [#allocation0], 16  }
   0xc   :  { %30 = vsyncadd [#allocation0], 4294967280 }
   0xd   :  { %8 = vsyncpa [#allocation0], 1 }

// kernel: custom-call.1
= control target key start
LH: loop header
LB: loop body
LE: loop exit
PB: predicated region body
PF: predicated region fallthrough
CT: control target
= control target key end

     0   :  { %s51_s0 = inlined_call_operand.hbm [shape: c64[4], index: 0, kind: input, shape index: {}]   ;;  %s52_s1 = inlined_call_operand.vmem [shape: f32[4], index: 1, kind: output, shape index: {}]  }
   0x1   :  { %s2_s8 = scalar_lea.hbm %s51_s0, 16 }
   0x2   :  { %3 = vsyncpa [#allocation0], 0  ;;  %s4_s11 = sshll.u32 %s52_s1, 4  ;;  %s5_s11 = int_to_ptr.vmem [resolvable:$true] %s4_s11 }
   0x3   :  { %s20_s12 = scalar_lea.vmem %s5_s11, 16  ;;  %p25_p1 = scmp.lt.s32.totalorder %s5_s11, %s5_s11 }
   0x4   :  { %p21_p0 = scmp.ne.s32.totalorder %s5_s11, %s20_s12  ;;  %p26_p2 = scmp.lt.s32.totalorder %s20_s12, %s20_s12 }
   0x6   :  { %p27_p3 = por %p26_p2, %p25_p1 }
   0x8   :  { %p28_p4 = pnand %p27_p3, %p21_p0 }
   0xa   :  { %31 = shalt.err (!%p28_p4)  }
   0xb   :  { %7 = dma.hbm_to_vmem [thread:$0]  %s2_s8, 16, %s5_s11, [#allocation0] }
   0xc   :  { %33 = dma.done.wait [#allocation0], 16  }
   0xd   :  { %34 = vsyncadd [#allocation0], 4294967280 }
   0xe   :  { %9 = vsyncpa [#allocation0], 1 }

// kernel: custom-call.5
= control target key start
LH: loop header
LB: loop body
LE: loop exit
PB: predicated region body
PF: predicated region fallthrough
CT: control target
= control target key end

     0   :  { %s51_s0 = inlined_call_operand.hbm [shape: c64[2,4,16,16], index: 0, kind: input, shape index: {}]   ;;  %s52_s1 = inlined_call_operand.vmem [shape: f32[2,4,16,16], index: 1, kind: output, shape index: {}]  }
   0x1   :  { %s2_s8 = scalar_lea.hbm %s51_s0, 2048 }
   0x2   :  { %3 = vsyncpa [#allocation0], 0  ;;  %s4_s11 = sshll.u32 %s52_s1, 4  ;;  %s5_s11 = int_to_ptr.vmem [resolvable:$true] %s4_s11 }
   0x3   :  { %s20_s12 = scalar_lea.vmem %s5_s11, 2048  ;;  %p25_p1 = scmp.lt.s32.totalorder %s5_s11, %s5_s11 }
   0x4   :  { %p21_p0 = scmp.ne.s32.totalorder %s5_s11, %s20_s12  ;;  %p26_p2 = scmp.lt.s32.totalorder %s20_s12, %s20_s12 }
   0x6   :  { %p27_p3 = por %p26_p2, %p25_p1 }
   0x8   :  { %p28_p4 = pnand %p27_p3, %p21_p0 }
   0xa   :  { %31 = shalt.err (!%p28_p4)  }
   0xb   :  { %7 = dma.hbm_to_vmem [thread:$0]  %s2_s8, 2048, %s5_s11, [#allocation0] }
   0xc   :  { %33 = dma.done.wait [#allocation0], 2048  }
   0xd   :  { %34 = vsyncadd [#allocation0], 4294965248 }
   0xe   :  { %9 = vsyncpa [#allocation0], 1 }

// kernel: custom-call.4
= control target key start
LH: loop header
LB: loop body
LE: loop exit
PB: predicated region body
PF: predicated region fallthrough
CT: control target
= control target key end

     0   :  { %2 = vsyncpa [#allocation0], 0  ;;  %s47_s0 = inlined_call_operand.hbm [shape: c64[2,4,16,16], index: 0, kind: input, shape index: {}]   ;;  %s48_s1 = inlined_call_operand.vmem [shape: f32[2,4,16,16], index: 1, kind: output, shape index: {}]  }
   0x1   :  { %s3_s8 = sshll.u32 %s48_s1, 4  ;;  %s4_s8 = int_to_ptr.vmem [resolvable:$true] %s3_s8 }
   0x2   :  { %s17_s9 = scalar_lea.vmem %s4_s8, 2048  ;;  %p22_p1 = scmp.lt.s32.totalorder %s4_s8, %s4_s8 }
   0x3   :  { %p18_p0 = scmp.ne.s32.totalorder %s4_s8, %s17_s9  ;;  %p23_p2 = scmp.lt.s32.totalorder %s17_s9, %s17_s9 }
   0x5   :  { %p24_p3 = por %p23_p2, %p22_p1 }
   0x7   :  { %p25_p4 = pnand %p24_p3, %p18_p0 }
   0x9   :  { %28 = shalt.err (!%p25_p4)  }
   0xa   :  { %6 = dma.hbm_to_vmem [thread:$0]  %s47_s0, 2048, %s4_s8, [#allocation0] }
   0xb   :  { %29 = dma.done.wait [#allocation0], 2048  }
   0xc   :  { %30 = vsyncadd [#allocation0], 4294965248 }
   0xd   :  { %8 = vsyncpa [#allocation0], 1 }

// kernel: custom-call.6
= control target key start
LH: loop header
LB: loop body
LE: loop exit
PB: predicated region body
PF: predicated region fallthrough
CT: control target
= control target key end

     0   :  { %s92_s0 = inlined_call_operand.vmem [shape: f32[2,4,16,16], index: 0, kind: input, shape index: {}]   ;;  %s93_s1 = inlined_call_operand.vmem [shape: f32[2,4,16,16], index: 1, kind: input, shape index: {}]   ;;  %s94_s2 = inlined_call_operand.hbm [shape: c64[2,4,16,16], index: 2, kind: output, shape index: {}]  }
   0x1   :  { %s3_s11 = scalar_lea.hbm %s94_s2, 2048 }
   0x2   :  { %4 = vsyncpa [#allocation0], 0  ;;  %s5_s14 = sshll.u32 %s92_s0, 4  ;;  %s6_s14 = int_to_ptr.vmem [resolvable:$true] %s5_s14 }
   0x3   :  { %s18_s15 = scalar_lea.vmem %s6_s14, 2048  ;;  %p23_p1 = scmp.lt.s32.totalorder %s6_s14, %s6_s14 }
   0x4   :  { %p19_p0 = scmp.ne.s32.totalorder %s6_s14, %s18_s15  ;;  %p24_p2 = scmp.lt.s32.totalorder %s18_s15, %s18_s15 }
   0x6   :  { %p25_p3 = por %p24_p2, %p23_p1 }
   0x8   :  { %p26_p4 = pnand %p25_p3, %p19_p0 }
   0xa   :  { %29 = shalt.err (!%p26_p4)  }
   0xb   :  { %8 = dma.vmem_to_hbm [thread:$0]  %s6_s14, 2048, %s94_s2, [#allocation0] }
   0xc   :  { %61 = dma.done.wait [#allocation0], 2048  }
   0xd   :  { %62 = vsyncadd [#allocation0], 4294965248 }
   0xe   :  { %10 = vsyncpa [#allocation0], 1 }
   0xf   :  { %11 = vsyncpa [#allocation1], 0  ;;  %s12_s0 = sshll.u32 %s93_s1, 4  ;;  %s13_s0 = int_to_ptr.vmem [resolvable:$true] %s12_s0 }
  0x10   :  { %s38_s20 = scalar_lea.vmem %s13_s0, 2048  ;;  %p43_p6 = scmp.lt.s32.totalorder %s13_s0, %s13_s0 }
  0x11   :  { %p39_p5 = scmp.ne.s32.totalorder %s13_s0, %s38_s20  ;;  %p44_p7 = scmp.lt.s32.totalorder %s38_s20, %s38_s20 }
  0x13   :  { %p45_p8 = por %p44_p7, %p43_p6 }
  0x15   :  { %p46_p9 = pnand %p45_p8, %p39_p5 }
  0x17   :  { %49 = shalt.err (!%p46_p9)  }
  0x18   :  { %15 = dma.vmem_to_hbm [thread:$0]  %s13_s0, 2048, %s3_s11, [#allocation1] }
  0x19   :  { %63 = dma.done.wait [#allocation1], 2048  }
  0x1a   :  { %64 = vsyncadd [#allocation1], 4294965248 }
  0x1b   :  { %17 = vsyncpa [#allocation1], 1 }

// kernel: frequency_instance_norm_2d.1
= control target key start
LH: loop header
LB: loop body
LE: loop exit
PB: predicated region body
PF: predicated region fallthrough
CT: control target
= control target key end

     0   :  { %v105_v3 = vmov 0   ;;  %v106_v8 = vmov 2   ;;  %v107_v9 = vmov 1   ;;  %v108_v10 = vmov 3   ;;  %s161_s1 = inlined_call_operand.vmem [shape: f32[1,8,256], index: 1, kind: input, shape index: {}]   ;;  %s162_s2 = inlined_call_operand.vmem [shape: f32[1,8,256], index: 2, kind: input, shape index: {}]   ;;  %s163_s0 = inlined_call_operand.vmem [shape: f32[1,8,8], index: 0, kind: input, shape index: {}]   ;;  %s164_s3 = inlined_call_operand.vmem [shape: f32[1,8,256], index: 3, kind: output, shape index: {0}]   ;;  %s165_s4 = inlined_call_operand.vmem [shape: f32[1,8,256], index: 4, kind: output, shape index: {1}]  }
   0x1   :  { %v16_v0 = vld [vmem:[%s161_s1] sm:$0xff]  ;;  %v17_v1 = vld [vmem:[%s161_s1 + $0x8] sm:$0xff]  ;;  %98 = vset.pattern.permute.xlu1 %v105_v3  ;;  %99 = vset.pattern.permute.xlu0 %v107_v9 }
   0x2   :  { %v18_v2 = vld [vmem:[%s162_s2] sm:$0xff]  ;;  %v20_v4 = vadd.f32 %v17_v1, %v16_v0  ;;  %v19_v5 = vld [vmem:[%s162_s2 + $0x8] sm:$0xff] }
   0x3   :  { %v48_v6 = vld [vmem:[%s163_s0] sm:$0xff]  ;;  %v24_v7 = vadd.f32 %v19_v5, %v18_v2 }
   0x4   :  { %51 = vperm.xlu1 %98, %v48_v6   ;;  %21 = vadd.xlane.f32.xlu0 %v20_v4 }
   0x8   :  { %100 = vset.pattern.permute.xlu1 %v106_v8  ;;  %25 = vadd.xlane.f32.xlu0 %v24_v7 }
   0x9   :  { %65 = vperm.xlu1 %100, %v48_v6  }
   0xd   :  { %101 = vset.pattern.permute.xlu1 %v108_v10 }
  0x1e   :  { %57 = vperm.xlu0 %99, %v48_v6  }
  0x22   :  { %102 = vset.pattern.permute.xlu0 %v108_v10 }
  0x7f   :  { %v52_v26 = vpop.permute.xlu1 %51 }
  0x84   :  { %v66_v27 = vpop.permute.xlu1 %65 }
  0x8d   :  { %v22_v11 = vpop.xlane.xlu0 %21 }
  0x8e   :  { %v23_v12 = vmul.f32 0.00390625, %v22_v11 }
  0x90   :  { %v28_v14 = vsub.f32 %v16_v0, %v23_v12  ;;  %v29_v15 = vsub.f32 %v17_v1, %v23_v12 }
  0x91   :  { %v26_v13 = vpop.xlane.xlu0 %25 }
  0x92   :  { %v27_v16 = vmul.f32 0.00390625, %v26_v13  ;;  %v32_v19 = vmul.f32 %v28_v14, %v28_v14  ;;  %v33_v20 = vmul.f32 %v29_v15, %v29_v15 }
  0x94   :  { %v30_v17 = vsub.f32 %v18_v2, %v27_v16  ;;  %v31_v18 = vsub.f32 %v19_v5, %v27_v16 }
  0x96   :  { %v34_v21 = vmul.f32 %v30_v17, %v30_v17  ;;  %v35_v22 = vmul.f32 %v31_v18, %v31_v18 }
  0x98   :  { %v36_v23 = vadd.f32 %v34_v21, %v32_v19  ;;  %v37_v24 = vadd.f32 %v35_v22, %v33_v20 }
  0x99   :  { %v58_v32 = vpop.permute.xlu0 %57 }
  0x9a   :  { %v38_v25 = vadd.f32 %v37_v24, %v36_v23 }
  0x9c   :  { %39 = vadd.xlane.f32.xlu1 %v38_v25 }
  0xad   :  { %79 = vperm.xlu1 %101, %v48_v6  }
 0x125   :  { %v40_v28 = vpop.xlane.xlu1 %39 }
 0x126   :  { %v41_v29 = vmul.f32 0.00390625, %v40_v28 }
 0x128   :  { %v42_v30 = vadd.f32 1e-05, %v41_v29 }
 0x129   :  { %v80_v47 = vpop.permute.xlu1 %79 }
 0x12a   :  { %103 = vrsqrt.f32 %v42_v30 }
 0x137   :  { %v104_v31 = vpop.eup %103 }
 0x138   :  { %v44_v33 = vmul.f32 %v104_v31, %v28_v14  ;;  %v45_v34 = vmul.f32 %v104_v31, %v29_v15  ;;  %v46_v35 = vmul.f32 %v104_v31, %v30_v17  ;;  %v47_v36 = vmul.f32 %v104_v31, %v31_v18 }
 0x13a   :  { %v54_v37 = vmul.f32 %v52_v26, %v44_v33  ;;  %v55_v38 = vmul.f32 %v52_v26, %v45_v34  ;;  %v60_v39 = vmul.f32 %v58_v32, %v46_v35  ;;  %v61_v40 = vmul.f32 %v58_v32, %v47_v36 }
 0x13b   :  { %v74_v41 = vmul.f32 %v58_v32, %v44_v33  ;;  %v75_v42 = vmul.f32 %v58_v32, %v45_v34  ;;  %v72_v43 = vmul.f32 %v52_v26, %v46_v35  ;;  %v73_v44 = vmul.f32 %v52_v26, %v47_v36 }
 0x13c   :  { %v62_v45 = vsub.f32 %v54_v37, %v60_v39  ;;  %v63_v46 = vsub.f32 %v55_v38, %v61_v40 }
 0x13d   :  { %v76_v48 = vadd.f32 %v74_v41, %v72_v43  ;;  %v77_v49 = vadd.f32 %v75_v42, %v73_v44 }
 0x13e   :  { %v68_v50 = vadd.f32 %v66_v27, %v62_v45  ;;  %v69_v51 = vadd.f32 %v66_v27, %v63_v46 }
 0x13f   :  { %v82_v52 = vadd.f32 %v80_v47, %v76_v48  ;;  %v83_v53 = vadd.f32 %v80_v47, %v77_v49 }
 0x140   :  { %70 = vst [vmem:[%s164_s3] sm:$0xff] %v68_v50  ;;  %71 = vst [vmem:[%s164_s3 + $0x8] sm:$0xff] %v69_v51 }
 0x141   :  { %84 = vst [vmem:[%s165_s4] sm:$0xff] %v82_v52  ;;  %85 = vst [vmem:[%s165_s4 + $0x8] sm:$0xff] %v83_v53 }

</bundles_post_ra>
